<compile_context>
chip_gen: v7x
topology: tpu7x:2x2x1
jax: 0.10.0
libtpu: 0.0.40
codegen_flags: <defaults>
</compile_context>

<pallas_src>
import math
import functools

import jax
import jax.numpy as jnp
from jax import lax
from jax.experimental import pallas as pl
from jax.experimental.pallas import tpu as pltpu


_SQRT_2 = math.sqrt(2.0)


def _gelu_exact(x):
    # nn.GELU() default is the exact (erf-based) GELU.
    return 0.5 * x * (1.0 + lax.erf(x / _SQRT_2))


def projection_head_kernel(x_ref, w1_ref, w2_ref, params_ref, o_ref, *, eps,
                           approximate_gelu):
    # projection = Linear(F -> P): weight-dtype MXU operands, f32 accumulation.
    proj = jnp.dot(x_ref[...].astype(w1_ref.dtype), w1_ref[...],
                   preferred_element_type=jnp.float32)
    proj = proj + params_ref[0:1, :]                                 # + b1

    if approximate_gelu:
        # tanh-approx GELU -> EUP slot (use only if numerics tolerance allows).
        proj = jax.nn.gelu(proj, approximate=True)
    else:
        proj = _gelu_exact(proj)                                     # == nn.GELU()

    # fc = Linear(P -> P): feed the MXU in the weight dtype; keep f32 `proj`
    # for the residual / LayerNorm.
    y = jnp.dot(proj.astype(w2_ref.dtype), w2_ref[...],
                preferred_element_type=jnp.float32)
    y = y + params_ref[1:2, :]                                       # + b2

    # resid_drop: Dropout in inference mode == identity.
    # TODO(synk): training-mode dropout (pltpu.prng_* mask) not implemented.

    # LayerNorm(fc_out + gelu(projection)) over the last axis -- one-pass stats.
    z = y + proj
    inv_p = 1.0 / z.shape[-1]
    mean = jnp.sum(z, axis=-1, keepdims=True) * inv_p
    mean_sq = jnp.sum(z * z, axis=-1, keepdims=True) * inv_p
    var = jnp.maximum(mean_sq - mean * mean, 0.0)
    zn = (z - mean) * lax.rsqrt(var + eps)
    out = zn * params_ref[2:3, :] + params_ref[3:4, :]               # gamma, beta

    o_ref[...] = out.astype(o_ref.dtype)


def _round_up(x, m):
    return ((x + m - 1) // m) * m


def _vmem_capacity_bytes():
    try:
        return int(pltpu.get_tpu_info().vmem_capacity_bytes)
    except Exception:
        return 128 << 20  # v5e/v6e default


def _is_multi_tensorcore(vmem_cap):
    # v7x: 2 TensorCores per chip and 64 MiB VMEM per TC; v5e/v6e: 1 TC, 128 MiB.
    try:
        kind = jax.devices()[0].device_kind.lower()
    except Exception:
        kind = ""
    return ("v7" in kind) or (vmem_cap <= (64 << 20))


def projection_head(features, w1, b1, w2, b2, gamma, beta, *, eps=1e-5,
                    tm=512, approximate_gelu=False, cast_weights_to_bf16=False):
    """features: [B, F]; w1: [F, P] (pre-transposed); w2: [P, P]; b/gamma/beta: [P].

    Note: P should be a multiple of 128 (lane-dense stores, full MXU columns);
    P < 128 falls back to masked partial stores.
    """
    B, F = features.shape
    P = w1.shape[1]
    out_dtype = features.dtype

    if cast_weights_to_bf16:
        # bf16 MXU path (v5e/v6e/v7x native); accumulation stays f32 in-kernel.
        w1 = w1.astype(jnp.bfloat16)
        w2 = w2.astype(jnp.bfloat16)
    # TODO(synk): optional fp8 weight path for v7x (bf16+fp8 MXU, no int8).

    # Pack the four (P,) parameter vectors into one lane-aligned f32 tile
    # (one DMA / one buffer instead of four sub-sublane ones).
    params = jnp.concatenate(
        [b1.reshape(1, P), b2.reshape(1, P),
         gamma.reshape(1, P), beta.reshape(1, P)], axis=0).astype(jnp.float32)

    vmem_cap = _vmem_capacity_bytes()
    multi_tc = _is_multi_tensorcore(vmem_cap)
    x_isz = jnp.dtype(features.dtype).itemsize
    o_isz = jnp.dtype(out_dtype).itemsize
    w_bytes = (F * P * jnp.dtype(w1.dtype).itemsize
               + P * P * jnp.dtype(w2.dtype).itemsize
               + 4 * P * 4)

    kernel = functools.partial(projection_head_kernel, eps=eps,
                               approximate_gelu=approximate_gelu)

    def build_and_run(weight_buffers):
        # --- batch tile: largest multiple of 8 that fits the VMEM budget -----
        resident = weight_buffers * w_bytes
        per_row = 2 * (F * x_isz + P * o_isz)      # double-buffered x/out tiles
        budget = max(vmem_cap - (8 << 20) - resident, 4 << 20)
        tm_cap = max(8, (budget // per_row) // 8 * 8)
        tm_eff = max(8, min((tm // 8) * 8, tm_cap, _round_up(B, 8)))
        if multi_tc:
            # Keep >= 2 grid steps so the "parallel" axis can shard across TCs.
            while tm_eff > 8 and pl.cdiv(B, tm_eff) < 2:
                tm_eff = max(8, ((tm_eff // 2) // 8) * 8)
        grid = pl.cdiv(B, tm_eff)   # ragged last tile: OOB stores are masked

        needed = 2 * tm_eff * (F * x_isz + P * o_isz) + resident
        vmem_limit = int(min(max(needed + (4 << 20), 32 << 20),
                             vmem_cap - (4 << 20)))
        # TODO(synk): if `resident` alone approaches the budget (large F/P on
        # v7x's 64 MiB), add K/N grid axes with an f32 accumulator scratch
        # instead of whole-weight-resident blocks.

        wmode = {"pipeline_mode": pl.Buffered(1)} if weight_buffers == 1 else {}

        cost = pl.CostEstimate(
            flops=2 * B * P * (F + P),
            transcendentals=B * P,
            bytes_accessed=B * F * x_isz + w_bytes + B * P * o_isz)

        return pl.pallas_call(
            kernel,
            out_shape=jax.ShapeDtypeStruct((B, P), out_dtype),
            grid_spec=pltpu.PrefetchScalarGridSpec(
                num_scalar_prefetch=0,
                grid=(grid,),
                in_specs=[
                    pl.BlockSpec((tm_eff, F), lambda i: (i, 0)),        # x tile
                    pl.BlockSpec((F, P), lambda i: (0, 0), **wmode),    # W1
                    pl.BlockSpec((P, P), lambda i: (0, 0), **wmode),    # W2
                    pl.BlockSpec((4, P), lambda i: (0, 0), **wmode),    # b1/b2/g/b
                ],
                out_specs=pl.BlockSpec((tm_eff, P), lambda i: (i, 0)),
            ),
            compiler_params=pltpu.CompilerParams(
                dimension_semantics=("parallel",),
                vmem_limit_bytes=vmem_limit),
            cost_estimate=cost,
        )(features, w1, w2, params)

    try:
        # Invariant weights: single pipeline buffer (constant index_maps).
        return build_and_run(weight_buffers=1)
    except Exception:
        # Fallback if this jax/Mosaic build rejects Buffered(1).
        return build_and_run(weight_buffers=2)


def reference(features, w1, b1, w2, b2, gamma, beta, eps=1e-5):
    proj = features @ w1 + b1
    proj = _gelu_exact(proj)
    y = proj @ w2 + b2
    z = y + proj
    mean = jnp.mean(z, axis=-1, keepdims=True)
    var = jnp.mean((z - mean) ** 2, axis=-1, keepdims=True)
    return (z - mean) * lax.rsqrt(var + eps) * gamma + beta


if __name__ == "__main__":
    # Small shapes consistent with the module: batch=8, features_dim=32, proj_dim=128
    B, FEAT, PROJ = 8, 32, 128

    key = jax.random.PRNGKey(0)
    k_x, k_w1, k_b1, k_w2, k_b2 = jax.random.split(key, 5)

    features = jax.random.normal(k_x, (B, FEAT), dtype=jnp.float32)

    # Deterministic parameter init (PyTorch-Linear-like uniform bounds).
    bound1 = 1.0 / math.sqrt(FEAT)
    w1 = jax.random.uniform(k_w1, (FEAT, PROJ), jnp.float32, -bound1, bound1)
    b1 = jax.random.uniform(k_b1, (PROJ,), jnp.float32, -bound1, bound1)
    bound2 = 1.0 / math.sqrt(PROJ)
    w2 = jax.random.uniform(k_w2, (PROJ, PROJ), jnp.float32, -bound2, bound2)
    b2 = jax.random.uniform(k_b2, (PROJ,), jnp.float32, -bound2, bound2)
    gamma = jnp.ones((PROJ,), jnp.float32)
    beta = jnp.zeros((PROJ,), jnp.float32)

    out = projection_head(features, w1, b1, w2, b2, gamma, beta)
    out = jax.block_until_ready(out)
    ref = reference(features, w1, b1, w2, b2, gamma, beta)
    assert out.shape == (B, PROJ)
    assert jnp.allclose(out, ref, atol=1e-4, rtol=1e-4), "mismatch vs reference"

    # Ragged batch (exercises the padless cdiv-grid / masked-last-tile path).
    B2 = 10
    features2 = jax.random.normal(jax.random.PRNGKey(1), (B2, FEAT), jnp.float32)
    out2 = jax.block_until_ready(
        projection_head(features2, w1, b1, w2, b2, gamma, beta))
    ref2 = reference(features2, w1, b1, w2, b2, gamma, beta)
    assert out2.shape == (B2, PROJ)
    assert jnp.allclose(out2, ref2, atol=1e-4, rtol=1e-4), "ragged mismatch"

    print("KERNEL_OK")
</pallas_src>

<mosaic_0001>
module attributes {stable_mosaic.version = 11 : i64} {
  func.func @projection_head_kernel(%arg0: i32, %arg1: memref<8x32xf32, #tpu.memory_space<vmem>>, %arg2: memref<32x128xf32, #tpu.memory_space<vmem>>, %arg3: memref<128x128xf32, #tpu.memory_space<vmem>>, %arg4: memref<4x128xf32, #tpu.memory_space<vmem>>, %arg5: memref<8x128xf32, #tpu.memory_space<vmem>>) attributes {dimension_semantics = [#tpu.dimension_semantics<parallel>], iteration_bounds = array<i64: 1>, scalar_prefetch = 0 : i64, scratch_operands = 0 : i64, tpu.core_type = #tpu.core_type<tc>, window_params = [{transform_indices = @transform_0, window_bounds = array<i64: 8, 32>}, {pipeline_mode = #tpu.pipeline_mode<synchronous>, transform_indices = @transform_1, window_bounds = array<i64: 32, 128>}, {pipeline_mode = #tpu.pipeline_mode<synchronous>, transform_indices = @transform_2, window_bounds = array<i64: 128, 128>}, {pipeline_mode = #tpu.pipeline_mode<synchronous>, transform_indices = @transform_3, window_bounds = array<i64: 4, 128>}, {transform_indices = @transform_4, window_bounds = array<i64: 8, 128>}]} {
    %c0 = arith.constant 0 : index
    %c0_0 = arith.constant 0 : index
    %0 = vector.load %arg1[%c0, %c0_0] : memref<8x32xf32, #tpu.memory_space<vmem>>, vector<8x32xf32>
    %c0_1 = arith.constant 0 : index
    %c0_2 = arith.constant 0 : index
    %1 = vector.load %arg2[%c0_1, %c0_2] : memref<32x128xf32, #tpu.memory_space<vmem>>, vector<32x128xf32>
    %cst = arith.constant dense<0.000000e+00> : vector<8x128xf32>
    %2 = tpu.matmul %0, %1, %cst {dimension_numbers = #tpu.dot_dimension_numbers<[1], [0], [0], [1], [0, 0, 1, 1], [], []>} : vector<8x32xf32>, vector<32x128xf32>, vector<8x128xf32> -> vector<8x128xf32>
    %c0_3 = arith.constant 0 : index
    %c0_4 = arith.constant 0 : index
    %3 = vector.load %arg4[%c0_3, %c0_4] : memref<4x128xf32, #tpu.memory_space<vmem>>, vector<1x128xf32>
    %4 = vector.broadcast %3 : vector<1x128xf32> to vector<8x128xf32>
    %5 = arith.addf %2, %4 : vector<8x128xf32>
    %cst_5 = arith.constant 5.000000e-01 : f32
    %6 = vector.broadcast %cst_5 : f32 to vector<8x128xf32>
    %7 = arith.mulf %6, %5 : vector<8x128xf32>
    %cst_6 = arith.constant 1.41421354 : f32
    %8 = vector.broadcast %cst_6 : f32 to vector<8x128xf32>
    %9 = arith.divf %5, %8 : vector<8x128xf32>
    %10 = math.erf %9 : vector<8x128xf32>
    %cst_7 = arith.constant 1.000000e+00 : f32
    %11 = vector.broadcast %cst_7 : f32 to vector<8x128xf32>
    %12 = arith.addf %11, %10 : vector<8x128xf32>
    %13 = arith.mulf %7, %12 : vector<8x128xf32>
    %c0_8 = arith.constant 0 : index
    %c0_9 = arith.constant 0 : index
    %14 = vector.load %arg3[%c0_8, %c0_9] : memref<128x128xf32, #tpu.memory_space<vmem>>, vector<128x128xf32>
    %cst_10 = arith.constant dense<0.000000e+00> : vector<8x128xf32>
    %15 = tpu.matmul %13, %14, %cst_10 {dimension_numbers = #tpu.dot_dimension_numbers<[1], [0], [0], [1], [0, 0, 1, 1], [], []>} : vector<8x128xf32>, vector<128x128xf32>, vector<8x128xf32> -> vector<8x128xf32>
    %c1 = arith.constant 1 : index
    %c0_11 = arith.constant 0 : index
    %16 = vector.load %arg4[%c1, %c0_11] : memref<4x128xf32, #tpu.memory_space<vmem>>, vector<1x128xf32>
    %17 = vector.broadcast %16 : vector<1x128xf32> to vector<8x128xf32>
    %18 = arith.addf %15, %17 : vector<8x128xf32>
    %19 = arith.addf %18, %13 : vector<8x128xf32>
    %cst_12 = arith.constant dense<0.000000e+00> : vector<8xf32>
    %20 = vector.multi_reduction <add>, %19, %cst_12 [1] : vector<8x128xf32> to vector<8xf32>
    %21 = vector.shape_cast %20 : vector<8xf32> to vector<8x1xf32>
    %cst_13 = arith.constant 7.812500e-03 : f32
    %22 = vector.broadcast %cst_13 : f32 to vector<8x1xf32>
    %23 = arith.mulf %21, %22 : vector<8x1xf32>
    %24 = arith.mulf %19, %19 : vector<8x128xf32>
    %cst_14 = arith.constant dense<0.000000e+00> : vector<8xf32>
    %25 = vector.multi_reduction <add>, %24, %cst_14 [1] : vector<8x128xf32> to vector<8xf32>
    %26 = vector.shape_cast %25 : vector<8xf32> to vector<8x1xf32>
    %cst_15 = arith.constant 7.812500e-03 : f32
    %27 = vector.broadcast %cst_15 : f32 to vector<8x1xf32>
    %28 = arith.mulf %26, %27 : vector<8x1xf32>
    %29 = arith.mulf %23, %23 : vector<8x1xf32>
    %30 = arith.subf %28, %29 : vector<8x1xf32>
    %cst_16 = arith.constant 0.000000e+00 : f32
    %31 = vector.broadcast %cst_16 : f32 to vector<8x1xf32>
    %32 = arith.maximumf %30, %31 : vector<8x1xf32>
    %33 = vector.broadcast %23 : vector<8x1xf32> to vector<8x128xf32>
    %34 = arith.subf %19, %33 : vector<8x128xf32>
    %cst_17 = arith.constant 9.99999974E-6 : f32
    %35 = vector.broadcast %cst_17 : f32 to vector<8x1xf32>
    %36 = arith.addf %32, %35 : vector<8x1xf32>
    %37 = math.rsqrt %36 : vector<8x1xf32>
    %38 = vector.broadcast %37 : vector<8x1xf32> to vector<8x128xf32>
    %39 = arith.mulf %34, %38 : vector<8x128xf32>
    %c2 = arith.constant 2 : index
    %c0_18 = arith.constant 0 : index
    %40 = vector.load %arg4[%c2, %c0_18] : memref<4x128xf32, #tpu.memory_space<vmem>>, vector<1x128xf32>
    %41 = vector.broadcast %40 : vector<1x128xf32> to vector<8x128xf32>
    %42 = arith.mulf %39, %41 : vector<8x128xf32>
    %c3 = arith.constant 3 : index
    %c0_19 = arith.constant 0 : index
    %43 = vector.load %arg4[%c3, %c0_19] : memref<4x128xf32, #tpu.memory_space<vmem>>, vector<1x128xf32>
    %44 = vector.broadcast %43 : vector<1x128xf32> to vector<8x128xf32>
    %45 = arith.addf %42, %44 : vector<8x128xf32>
    %c0_20 = arith.constant 0 : index
    %c0_21 = arith.constant 0 : index
    %46 = vector.load %arg5[%c0_20, %c0_21] : memref<8x128xf32, #tpu.memory_space<vmem>>, vector<8x128xf32>
    tpu.vector_store %arg5[%c0_20, %c0_21], %45 {strides = array<i32>} : memref<8x128xf32, #tpu.memory_space<vmem>>, vector<8x128xf32>,
    return
  }
  func.func @transform_0(%arg0: i32) -> (i32, i32) {
    %c0_i32 = arith.constant 0 : i32
    %c0_i32_0 = arith.constant 0 : i32
    return %arg0, %c0_i32 : i32, i32
  }
  func.func @transform_1(%arg0: i32) -> (i32, i32) {
    %c0_i32 = arith.constant 0 : i32
    %c0_i32_0 = arith.constant 0 : i32
    %c0_i32_1 = arith.constant 0 : i32
    return %c0_i32, %c0_i32_0 : i32, i32
  }
  func.func @transform_2(%arg0: i32) -> (i32, i32) {
    %c0_i32 = arith.constant 0 : i32
    %c0_i32_0 = arith.constant 0 : i32
    %c0_i32_1 = arith.constant 0 : i32
    return %c0_i32, %c0_i32_0 : i32, i32
  }
  func.func @transform_3(%arg0: i32) -> (i32, i32) {
    %c0_i32 = arith.constant 0 : i32
    %c0_i32_0 = arith.constant 0 : i32
    %c0_i32_1 = arith.constant 0 : i32
    return %c0_i32, %c0_i32_0 : i32, i32
  }
  func.func @transform_4(%arg0: i32) -> (i32, i32) {
    %c0_i32 = arith.constant 0 : i32
    %c0_i32_0 = arith.constant 0 : i32
    return %arg0, %c0_i32 : i32, i32
  }
}

module attributes {stable_mosaic.version = 11 : i64} {
  func.func @projection_head_kernel(%arg0: i32, %arg1: memref<8x32xf32, #tpu.memory_space<vmem>>, %arg2: memref<32x128xf32, #tpu.memory_space<vmem>>, %arg3: memref<128x128xf32, #tpu.memory_space<vmem>>, %arg4: memref<4x128xf32, #tpu.memory_space<vmem>>, %arg5: memref<8x128xf32, #tpu.memory_space<vmem>>) attributes {dimension_semantics = [#tpu.dimension_semantics<parallel>], iteration_bounds = array<i64: 1>, scalar_prefetch = 0 : i64, scratch_operands = 0 : i64, tpu.core_type = #tpu.core_type<tc>, window_params = [{transform_indices = @transform_0, window_bounds = array<i64: 8, 32>}, {pipeline_mode = #tpu.pipeline_mode<synchronous>, transform_indices = @transform_1, window_bounds = array<i64: 32, 128>}, {pipeline_mode = #tpu.pipeline_mode<synchronous>, transform_indices = @transform_2, window_bounds = array<i64: 128, 128>}, {pipeline_mode = #tpu.pipeline_mode<synchronous>, transform_indices = @transform_3, window_bounds = array<i64: 4, 128>}, {transform_indices = @transform_4, window_bounds = array<i64: 8, 128>}]} {
    %c0 = arith.constant 0 : index
    %c0_0 = arith.constant 0 : index
    %0 = vector.load %arg1[%c0, %c0_0] : memref<8x32xf32, #tpu.memory_space<vmem>>, vector<8x32xf32>
    %c0_1 = arith.constant 0 : index
    %c0_2 = arith.constant 0 : index
    %1 = vector.load %arg2[%c0_1, %c0_2] : memref<32x128xf32, #tpu.memory_space<vmem>>, vector<32x128xf32>
    %cst = arith.constant dense<0.000000e+00> : vector<8x128xf32>
    %2 = tpu.matmul %0, %1, %cst {dimension_numbers = #tpu.dot_dimension_numbers<[1], [0], [0], [1], [0, 0, 1, 1], [], []>} : vector<8x32xf32>, vector<32x128xf32>, vector<8x128xf32> -> vector<8x128xf32>
    %c0_3 = arith.constant 0 : index
    %c0_4 = arith.constant 0 : index
    %3 = vector.load %arg4[%c0_3, %c0_4] : memref<4x128xf32, #tpu.memory_space<vmem>>, vector<1x128xf32>
    %4 = vector.broadcast %3 : vector<1x128xf32> to vector<8x128xf32>
    %5 = arith.addf %2, %4 : vector<8x128xf32>
    %cst_5 = arith.constant 5.000000e-01 : f32
    %6 = vector.broadcast %cst_5 : f32 to vector<8x128xf32>
    %7 = arith.mulf %6, %5 : vector<8x128xf32>
    %cst_6 = arith.constant 1.41421354 : f32
    %8 = vector.broadcast %cst_6 : f32 to vector<8x128xf32>
    %9 = arith.divf %5, %8 : vector<8x128xf32>
    %10 = math.erf %9 : vector<8x128xf32>
    %cst_7 = arith.constant 1.000000e+00 : f32
    %11 = vector.broadcast %cst_7 : f32 to vector<8x128xf32>
    %12 = arith.addf %11, %10 : vector<8x128xf32>
    %13 = arith.mulf %7, %12 : vector<8x128xf32>
    %c0_8 = arith.constant 0 : index
    %c0_9 = arith.constant 0 : index
    %14 = vector.load %arg3[%c0_8, %c0_9] : memref<128x128xf32, #tpu.memory_space<vmem>>, vector<128x128xf32>
    %cst_10 = arith.constant dense<0.000000e+00> : vector<8x128xf32>
    %15 = tpu.matmul %13, %14, %cst_10 {dimension_numbers = #tpu.dot_dimension_numbers<[1], [0], [0], [1], [0, 0, 1, 1], [], []>} : vector<8x128xf32>, vector<128x128xf32>, vector<8x128xf32> -> vector<8x128xf32>
    %c1 = arith.constant 1 : index
    %c0_11 = arith.constant 0 : index
    %16 = vector.load %arg4[%c1, %c0_11] : memref<4x128xf32, #tpu.memory_space<vmem>>, vector<1x128xf32>
    %17 = vector.broadcast %16 : vector<1x128xf32> to vector<8x128xf32>
    %18 = arith.addf %15, %17 : vector<8x128xf32>
    %19 = arith.addf %18, %13 : vector<8x128xf32>
    %cst_12 = arith.constant dense<0.000000e+00> : vector<8xf32>
    %20 = vector.multi_reduction <add>, %19, %cst_12 [1] : vector<8x128xf32> to vector<8xf32>
    %21 = vector.shape_cast %20 : vector<8xf32> to vector<8x1xf32>
    %cst_13 = arith.constant 7.812500e-03 : f32
    %22 = vector.broadcast %cst_13 : f32 to vector<8x1xf32>
    %23 = arith.mulf %21, %22 : vector<8x1xf32>
    %24 = arith.mulf %19, %19 : vector<8x128xf32>
    %cst_14 = arith.constant dense<0.000000e+00> : vector<8xf32>
    %25 = vector.multi_reduction <add>, %24, %cst_14 [1] : vector<8x128xf32> to vector<8xf32>
    %26 = vector.shape_cast %25 : vector<8xf32> to vector<8x1xf32>
    %cst_15 = arith.constant 7.812500e-03 : f32
    %27 = vector.broadcast %cst_15 : f32 to vector<8x1xf32>
    %28 = arith.mulf %26, %27 : vector<8x1xf32>
    %29 = arith.mulf %23, %23 : vector<8x1xf32>
    %30 = arith.subf %28, %29 : vector<8x1xf32>
    %cst_16 = arith.constant 0.000000e+00 : f32
    %31 = vector.broadcast %cst_16 : f32 to vector<8x1xf32>
    %32 = arith.maximumf %30, %31 : vector<8x1xf32>
    %33 = vector.broadcast %23 : vector<8x1xf32> to vector<8x128xf32>
    %34 = arith.subf %19, %33 : vector<8x128xf32>
    %cst_17 = arith.constant 9.99999974E-6 : f32
    %35 = vector.broadcast %cst_17 : f32 to vector<8x1xf32>
    %36 = arith.addf %32, %35 : vector<8x1xf32>
    %37 = math.rsqrt %36 : vector<8x1xf32>
    %38 = vector.broadcast %37 : vector<8x1xf32> to vector<8x128xf32>
    %39 = arith.mulf %34, %38 : vector<8x128xf32>
    %c2 = arith.constant 2 : index
    %c0_18 = arith.constant 0 : index
    %40 = vector.load %arg4[%c2, %c0_18] : memref<4x128xf32, #tpu.memory_space<vmem>>, vector<1x128xf32>
    %41 = vector.broadcast %40 : vector<1x128xf32> to vector<8x128xf32>
    %42 = arith.mulf %39, %41 : vector<8x128xf32>
    %c3 = arith.constant 3 : index
    %c0_19 = arith.constant 0 : index
    %43 = vector.load %arg4[%c3, %c0_19] : memref<4x128xf32, #tpu.memory_space<vmem>>, vector<1x128xf32>
    %44 = vector.broadcast %43 : vector<1x128xf32> to vector<8x128xf32>
    %45 = arith.addf %42, %44 : vector<8x128xf32>
    %c0_20 = arith.constant 0 : index
    %c0_21 = arith.constant 0 : index
    %46 = vector.load %arg5[%c0_20, %c0_21] : memref<8x128xf32, #tpu.memory_space<vmem>>, vector<8x128xf32>
    tpu.vector_store %arg5[%c0_20, %c0_21], %45 {strides = array<i32>} : memref<8x128xf32, #tpu.memory_space<vmem>>, vector<8x128xf32>,
    return
  }
  func.func @transform_0(%arg0: i32) -> (i32, i32) {
    %c0_i32 = arith.constant 0 : i32
    %c0_i32_0 = arith.constant 0 : i32
    return %arg0, %c0_i32 : i32, i32
  }
  func.func @transform_1(%arg0: i32) -> (i32, i32) {
    %c0_i32 = arith.constant 0 : i32
    %c0_i32_0 = arith.constant 0 : i32
    %c0_i32_1 = arith.constant 0 : i32
    return %c0_i32, %c0_i32_0 : i32, i32
  }
  func.func @transform_2(%arg0: i32) -> (i32, i32) {
    %c0_i32 = arith.constant 0 : i32
    %c0_i32_0 = arith.constant 0 : i32
    %c0_i32_1 = arith.constant 0 : i32
    return %c0_i32, %c0_i32_0 : i32, i32
  }
  func.func @transform_3(%arg0: i32) -> (i32, i32) {
    %c0_i32 = arith.constant 0 : i32
    %c0_i32_0 = arith.constant 0 : i32
    %c0_i32_1 = arith.constant 0 : i32
    return %c0_i32, %c0_i32_0 : i32, i32
  }
  func.func @transform_4(%arg0: i32) -> (i32, i32) {
    %c0_i32 = arith.constant 0 : i32
    %c0_i32_0 = arith.constant 0 : i32
    return %arg0, %c0_i32 : i32, i32
  }
}

</mosaic_0001>

<bundles_post_ra>
// kernel: tpu_custom_call.1
= control target key start
LH: loop header
LB: loop body
LE: loop exit
PB: predicated region body
PF: predicated region fallthrough
CT: control target
= control target key end

     0   :  { %9 = vsyncpa [#allocation3], 0  ;;  %s592_s0 = inlined_call_operand.hbm [shape: f32[8,32], index: 0, kind: input, shape index: {}]   ;;  %s593_s1 = inlined_call_operand.hbm [shape: f32[32,128], index: 1, kind: input, shape index: {}]   ;;  %s594_s2 = inlined_call_operand.hbm [shape: f32[128,128], index: 2, kind: input, shape index: {}]   ;;  %s595_s3 = inlined_call_operand.vmem [shape: f32[4,128], index: 3, kind: input, shape index: {}]   ;;  %s596_s4 = inlined_call_operand.hbm [shape: f32[8,128], index: 4, kind: output, shape index: {}]  }
   0x1   :  { %10 = vsyncpa [#allocation6], 0 }
   0x2   :  { %11 = vsyncpa [#allocation4], 0  ;;  %s492_s15 = smov [#allocation5]   ;;  %s398_s19 = scalar_lea.hbm %s593_s1, 512 }
   0x3   :  { %s27_s16 = sshll.u32 %s492_s15, 4  ;;  %p399_p0 = scmp.ne.s32.totalorder %s593_s1, %s398_s19  ;;  %s28_s16 = int_to_ptr.vmem [resolvable:$true] %s27_s16 }
   0x4   :  { %p402_p1 = scmp.lt.u32.totalorder %s398_s19, %s593_s1 }
   0x6   :  { %p404_p2 = pnand %p402_p1, %p399_p0 }
   0x8   :  { %407 = shalt.err (!%p404_p2)
}
   0x9   :  { %s408_s24 = scalar_lea.vmem %s28_s16, 512  ;;  %p413_p4 = scmp.lt.s32.totalorder %s28_s16, %s28_s16 }
   0xa   :  { %p409_p3 = scmp.ne.s32.totalorder %s28_s16, %s408_s24  ;;  %p414_p5 = scmp.lt.s32.totalorder %s408_s24, %s408_s24 }
   0xc   :  { %p415_p6 = por %p414_p5, %p413_p4 }
   0xe   :  { %p416_p7 = pnand %p415_p6, %p409_p3 }
  0x10   :  { %419 = shalt.err (!%p416_p7)
}
  0x11   :  { %s493_s25 = smov 128   ;;  %s494_s26 = smov 8  }
  0x12   :  { %33 = dma.hbm_to_vmem [thread:$0]  %s593_s1, 512, %s28_s16, [#allocation6], %s493_s25, %s493_s25, %s494_s26  }
  0x13   :  { %s495_s29 = smov [#allocation2]   ;;  %s496_s5 = smov [#allocation7]  }
  0x14   :  { %s18_s30 = sshll.u32 %s495_s29, 4  ;;  %s39_s6 = sshll.u32 %s496_s5, 4  ;;  %s19_s30 = int_to_ptr.vmem [resolvable:$true] %s18_s30  ;;  %s40_s6 = int_to_ptr.vmem [resolvable:$true] %s39_s6 }
  0x15   :  { %s420_s9 = scalar_lea.hbm %s592_s0, 128 }
  0x16   :  { %p421_p8 = scmp.ne.s32.totalorder %s592_s0, %s420_s9  ;;  %p424_p9 = scmp.lt.u32.totalorder %s420_s9, %s592_s0 }
  0x18   :  { %p426_p10 = pnand %p424_p9, %p421_p8 }
  0x1a   :  { %429 = shalt.err (!%p426_p10)
}
  0x1b   :  { %s430_s1 = scalar_lea.vmem %s19_s30, 128  ;;  %p435_p12 = scmp.lt.s32.totalorder %s19_s30, %s19_s30 }
  0x1c   :  { %p431_p11 = scmp.ne.s32.totalorder %s19_s30, %s430_s1  ;;  %p436_p13 = scmp.lt.s32.totalorder %s430_s1, %s430_s1 }
  0x1e   :  { %p437_p0 = por %p436_p13, %p435_p12 }
  0x20   :  { %p438_p1 = pnand %p437_p0, %p431_p11 }
  0x22   :  { %441 = shalt.err (!%p438_p1)
}
  0x23   :  { %21 = dma.hbm_to_vmem [thread:$0]  %s592_s0, 128, %s19_s30, [#allocation3]  }
  0x24   :  { %s442_s18 = scalar_lea.hbm %s594_s2, 2048 }
  0x25   :  { %p443_p2 = scmp.ne.s32.totalorder %s594_s2, %s442_s18  ;;  %p446_p3 = scmp.lt.u32.totalorder %s442_s18, %s594_s2 }
  0x27   :  { %p448_p4 = pnand %p446_p3, %p443_p2 }
  0x29   :  { %451 = shalt.err (!%p448_p4)
}
  0x2a   :  { %s452_s23 = scalar_lea.vmem %s40_s6, 2048  ;;  %p457_p6 = scmp.lt.s32.totalorder %s40_s6, %s40_s6 }
  0x2b   :  { %p453_p5 = scmp.ne.s32.totalorder %s40_s6, %s452_s23  ;;  %p458_p7 = scmp.lt.s32.totalorder %s452_s23, %s452_s23 }
  0x2d   :  { %p459_p8 = por %p458_p7, %p457_p6 }
  0x2f   :  { %p460_p9 = pnand %p459_p8, %p453_p5 }
  0x31   :  { %463 = shalt.err (!%p460_p9)
}
  0x32   :  { %45 = dma.hbm_to_vmem [thread:$0]  %s594_s2, 2048, %s40_s6, [#allocation6], %s493_s25, %s493_s25, %s494_s26  }
  0x33   :  { %486 = dma.done.wait [#allocation3], 128  }
  0x34   :  { %487 = vsyncadd [#allocation3], 4294967168 }
  0x35   :  { %488 = dma.done.wait [#allocation6], 2560  }
  0x36   :  { %489 = vsyncadd [#allocation6], 4294964736  ;;  %v497_v0 = vmov 0.0|0.0   ;;  %vm498_vm0 = vmmov 0   ;;  %v499_v1 = vmov 0.0   ;;  %v58_v2 = vld [vmem:[#allocation5] sm:$0xff] }
  0x37   :  { %355 = vmatprep.subr.bf16.mxu0 %v497_v0  ;;  %317 = vmatprep.mubr.msk.f32.mxu0 %vm498_vm0, %v499_v1  ;;  %v59_v3 = vld [vmem:[#allocation5 + $0x8] sm:$0xff]  ;;  %v60_v4 = vld [vmem:[#allocation5 + $0x10] sm:$0xff]  ;;  %v61_v6 = vld [vmem:[#allocation5 + $0x18] sm:$0xff]  ;;  %vm67_vm1 = vcmask 261120   ;;  %s500_s6 = smov [#allocation8]  }
  0x38   :  { %361 = vmatprep.subr.bf16.mxu1 %v497_v0  ;;  %352 = vmatprep.mubr.msk.f32.mxu1 %vm498_vm0, %v499_v1  ;;  %v356_v5 = vpack.c.bf16 %v59_v3, %v58_v2  ;;  %v147_v7 = vld [vmem:[#allocation7] sm:$0xff]  ;;  %v148_v8 = vld [vmem:[#allocation7 + $0x8] sm:$0xff]  ;;  %v149_v9 = vld [vmem:[#allocation7 + $0x10] sm:$0xff]  ;;  %v359_v11 = vpack.c.bf16 %v61_v6, %v60_v4  ;;  %s272_s7 = sshll.u32 %s500_s6, 4  ;;  %s273_s7 = int_to_ptr.vmem [resolvable:$true] %s272_s7 }
  0x39   :  { %v150_v10 = vld [vmem:[#allocation7 + $0x18] sm:$0xff]  ;;  %v362_v12 = vpack.c.bf16 %v148_v8, %v147_v7  ;;  %v151_v14 = vld [vmem:[#allocation7 + $0x20] sm:$0xff]  ;;  %v152_v15 = vld [vmem:[#allocation7 + $0x28] sm:$0xff]  ;;  %s464_s8 = scalar_lea.vmem %s273_s7, 128  ;;  %p469_p11 = scmp.lt.s32.totalorder %s273_s7, %s273_s7 }
  0x3a   :  { %357 = vmatpush3.bf16.msra.mxu0 %v356_v5  ;;  %v365_v13 = vpack.c.bf16 %v150_v10, %v149_v9  ;;  %v57_v16 = vld [vmem:[#allocation2] sm:$0xff]  ;;  %v368_v17 = vpack.c.bf16 %v152_v15, %v151_v14  ;;  %v153_v18 = vld [vmem:[#allocation7 + $0x30] sm:$0xff]  ;;  %v155_v21 = vld [vmem:[#allocation7 + $0x40] sm:$0xff]  ;;  %p465_p10 = scmp.ne.s32.totalorder %s273_s7, %s464_s8  ;;  %p470_p12 = scmp.lt.s32.totalorder %s464_s8, %s464_s8 }
  0x3b   :  { %358 = vmatprep.subr.bf16.mxu0 %v497_v0  ;;  %363 = vmatpush3.bf16.msra.mxu1 %v362_v12  ;;  %v154_v19 = vld [vmem:[#allocation7 + $0x38] sm:$0xff]  ;;  %v156_v22 = vld [vmem:[#allocation7 + $0x48] sm:$0xff]  ;;  %v157_v24 = vld [vmem:[#allocation7 + $0x50] sm:$0xff] }
  0x3c   :  { %364 = vmatprep.subr.bf16.mxu1 %v497_v0  ;;  %v371_v20 = vpack.c.bf16 %v154_v19, %v153_v18  ;;  %v374_v23 = vpack.c.bf16 %v156_v22, %v155_v21  ;;  %v158_v25 = vld [vmem:[#allocation7 + $0x58] sm:$0xff]  ;;  %v159_v27 = vld [vmem:[#allocation7 + $0x60] sm:$0xff]  ;;  %v160_v28 = vld [vmem:[#allocation7 + $0x68] sm:$0xff]  ;;  %p471_p13 = por %p470_p12, %p469_p11 }
  0x3d   :  { %v377_v26 = vpack.c.bf16 %v158_v25, %v157_v24  ;;  %v380_v29 = vpack.c.bf16 %v160_v28, %v159_v27  ;;  %v161_v30 = vld [vmem:[#allocation7 + $0x70] sm:$0xff]  ;;  %v162_v31 = vld [vmem:[#allocation7 + $0x78] sm:$0xff] }
  0x3e   :  { %360 = vmatpush3.bf16.msra.mxu0 %v359_v11  ;;  %v383_v32 = vpack.c.bf16 %v162_v31, %v161_v30  ;;  %v282_v33 = vld [vmem:[%s595_s3] ss:$0 sm:$0xff]  ;;  %v284_v42 = vld [vmem:[%s595_s3 + $0x1] ss:$0 sm:$0xff]  ;;  %v285_v58 = vld [vmem:[%s595_s3 + $0x2] ss:$0 sm:$0xff]  ;;  %p472_p0 = pnand %p471_p13, %p465_p10 }
  0x3f   :  { %366 = vmatpush3.bf16.msra.mxu1 %v365_v13  ;;  %v286_v60 = vld [vmem:[%s595_s3 + $0x3] ss:$0 sm:$0xff] }
  0x40   :  { %367 = vmatprep.subr.bf16.mxu1 %v497_v0 }
  0x41   :  { %318 = vmatmul.mubr.msk.f32.vlgmr.msra.gmra.mrb[0].mxu0 %vm67_vm1, %v57_v16 }
  0x43   :  { %369 = vmatpush3.bf16.msra.mxu1 %v368_v17 }
  0x44   :  { %370 = vmatprep.subr.bf16.mxu1 %v497_v0 }
  0x47   :  { %372 = vmatpush3.bf16.msra.mxu1 %v371_v20 }
  0x48   :  { %373 = vmatprep.subr.bf16.mxu1 %v497_v0 }
  0x4b   :  { %375 = vmatpush3.bf16.msra.mxu1 %v374_v23 }
  0x4c   :  { %376 = vmatprep.subr.bf16.mxu1 %v497_v0 }
  0x4f   :  { %378 = vmatpush3.bf16.msra.mxu1 %v377_v26 }
  0x50   :  { %379 = vmatprep.subr.bf16.mxu1 %v497_v0 }
  0x53   :  { %381 = vmatpush3.bf16.msra.mxu1 %v380_v29 }
  0x54   :  { %382 = vmatprep.subr.bf16.mxu1 %v497_v0 }
  0x57   :  { %384 = vmatpush3.bf16.msra.mxu1 %v383_v32 }
 0x114   :  { %v137_v34 = vpop.f32.mrb[0].mxu0 }
 0x115   :  { %v138_v35 = vadd.f32 %v282_v33, %v137_v34  ;;  %v319_v36 = vpop.f32.mrb[1].mxu0 }
 0x117   :  { %v143_v37 = vmul.f32 0.70710677, %v138_v35  ;;  %v141_v39 = vmul.f32 0.5, %v138_v35 }
 0x119   :  { %394 = verf.f32 %v143_v37 }
 0x123   :  { %v395_v38 = vpop.eup %394 }
 0x124   :  { %v145_v40 = vadd.f32 1.0, %v395_v38 }
 0x126   :  { %v146_v41 = vmul.f32 %v145_v40, %v141_v39 }
 0x128   :  { %353 = vmatmul.mubr.f32.vlgmr.msra.gmra.mrb[0].mxu1 %v146_v41 }
 0x1fb   :  { %v234_v43 = vpop.f32.mrb[0].mxu1 }
 0x1fc   :  { %v235_v44 = vadd.f32 %v284_v42, %v234_v43  ;;  %v354_v45 = vpop.f32.mrb[1].mxu1 }
 0x1fe   :  { %v238_v46 = vadd.f32 %v235_v44, %v146_v41 }
 0x200   :  { %239 = vadd.xlane.f32.xlu0 %v238_v46  ;;  %v242_v47 = vmul.f32 %v238_v46, %v238_v46 }
 0x204   :  { %243 = vadd.xlane.f32.xlu0 %v242_v47 }
 0x28d   :  { %v240_v48 = vpop.xlane.xlu0 %239 }
 0x28e   :  { %v241_v49 = vmul.f32 0.0078125, %v240_v48 }
 0x290   :  { %v246_v51 = vmul.f32 %v241_v49, %v241_v49  ;;  %v249_v56 = vsub.f32 %v238_v46, %v241_v49 }
 0x291   :  { %v244_v50 = vpop.xlane.xlu0 %243 }
 0x292   :  { %v245_v52 = vmul.f32 0.0078125, %v244_v50 }
 0x294   :  { %v247_v53 = vsub.f32 %v245_v52, %v246_v51 }
 0x296   :  { %v248_v54 = vmax.f32 %v247_v53, 0.0 }
 0x298   :  { %v250_v55 = vadd.f32 1e-05, %v248_v54 }
 0x29a   :  { %396 = vrsqrt.f32 %v250_v55 }
 0x2a4   :  { %v397_v57 = vpop.eup %396 }
 0x2a5   :  { %v252_v59 = vmul.f32 %v397_v57, %v249_v56 }
 0x2a7   :  { %v258_v61 = vmul.f32 %v285_v58, %v252_v59 }
 0x2a9   :  { %v264_v62 = vadd.f32 %v286_v60, %v258_v61 }
 0x2ab   :  { %265 = vst [vmem:[#allocation8] sm:$0xff] %v264_v62 }
 0x2ac   :  { %475 = shalt.err (!%p472_p0)
}
 0x2ad   :  { %s476_s11 = scalar_lea.hbm %s596_s4, 128 }
 0x2ae   :  { %p477_p1 = scmp.ne.s32.totalorder %s596_s4, %s476_s11  ;;  %p480_p2 = scmp.lt.u32.totalorder %s476_s11, %s596_s4 }
 0x2b0   :  { %p482_p3 = pnand %p480_p2, %p477_p1 }
 0x2b2   :  { %485 = shalt.err (!%p482_p3)
}
 0x2b3   :  { %275 = dma.vmem_to_hbm [thread:$0]  %s273_s7, 128, %s596_s4, [#allocation4]  }
 0x2b4   :  { %490 = dma.done.wait [#allocation4], 128  }
 0x2b5   :  { %491 = vsyncadd [#allocation4], 4294967168 }
 0x2b6   :  { %279 = vsyncpa [#allocation3], 1 }
 0x2b7   :  { %280 = vsyncpa [#allocation6], 1 }
 0x2b8   :  { %281 = vsyncpa [#allocation4], 1 }

// kernel: tpu_custom_call.1
= control target key start
LH: loop header
LB: loop body
LE: loop exit
PB: predicated region body
PF: predicated region fallthrough
CT: control target
= control target key end

     0   :  { %9 = vsyncpa [#allocation3], 0  ;;  %s592_s0 = inlined_call_operand.hbm [shape: f32[8,32], index: 0, kind: input, shape index: {}]   ;;  %s593_s1 = inlined_call_operand.hbm [shape: f32[32,128], index: 1, kind: input, shape index: {}]   ;;  %s594_s2 = inlined_call_operand.hbm [shape: f32[128,128], index: 2, kind: input, shape index: {}]   ;;  %s595_s3 = inlined_call_operand.vmem [shape: f32[4,128], index: 3, kind: input, shape index: {}]   ;;  %s596_s4 = inlined_call_operand.hbm [shape: f32[8,128], index: 4, kind: output, shape index: {}]  }
   0x1   :  { %10 = vsyncpa [#allocation6], 0 }
   0x2   :  { %11 = vsyncpa [#allocation4], 0  ;;  %s492_s15 = smov [#allocation5]   ;;  %s398_s19 = scalar_lea.hbm %s593_s1, 512 }
   0x3   :  { %s27_s16 = sshll.u32 %s492_s15, 4  ;;  %p399_p0 = scmp.ne.s32.totalorder %s593_s1, %s398_s19  ;;  %s28_s16 = int_to_ptr.vmem [resolvable:$true] %s27_s16 }
   0x4   :  { %p402_p1 = scmp.lt.u32.totalorder %s398_s19, %s593_s1 }
   0x6   :  { %p404_p2 = pnand %p402_p1, %p399_p0 }
   0x8   :  { %407 = shalt.err (!%p404_p2)
}
   0x9   :  { %s408_s24 = scalar_lea.vmem %s28_s16, 512  ;;  %p413_p4 = scmp.lt.s32.totalorder %s28_s16, %s28_s16 }
   0xa   :  { %p409_p3 = scmp.ne.s32.totalorder %s28_s16, %s408_s24  ;;  %p414_p5 = scmp.lt.s32.totalorder %s408_s24, %s408_s24 }
   0xc   :  { %p415_p6 = por %p414_p5, %p413_p4 }
   0xe   :  { %p416_p7 = pnand %p415_p6, %p409_p3 }
  0x10   :  { %419 = shalt.err (!%p416_p7)
}
  0x11   :  { %s493_s25 = smov 128   ;;  %s494_s26 = smov 8  }
  0x12   :  { %33 = dma.hbm_to_vmem [thread:$0]  %s593_s1, 512, %s28_s16, [#allocation6], %s493_s25, %s493_s25, %s494_s26  }
  0x13   :  { %s495_s29 = smov [#allocation2]   ;;  %s496_s5 = smov [#allocation7]  }
  0x14   :  { %s18_s30 = sshll.u32 %s495_s29, 4  ;;  %s39_s6 = sshll.u32 %s496_s5, 4  ;;  %s19_s30 = int_to_ptr.vmem [resolvable:$true] %s18_s30  ;;  %s40_s6 = int_to_ptr.vmem [resolvable:$true] %s39_s6 }
  0x15   :  { %s420_s9 = scalar_lea.hbm %s592_s0, 128 }
  0x16   :  { %p421_p8 = scmp.ne.s32.totalorder %s592_s0, %s420_s9  ;;  %p424_p9 = scmp.lt.u32.totalorder %s420_s9, %s592_s0 }
  0x18   :  { %p426_p10 = pnand %p424_p9, %p421_p8 }
  0x1a   :  { %429 = shalt.err (!%p426_p10)
}
  0x1b   :  { %s430_s1 = scalar_lea.vmem %s19_s30, 128  ;;  %p435_p12 = scmp.lt.s32.totalorder %s19_s30, %s19_s30 }
  0x1c   :  { %p431_p11 = scmp.ne.s32.totalorder %s19_s30, %s430_s1  ;;  %p436_p13 = scmp.lt.s32.totalorder %s430_s1, %s430_s1 }
  0x1e   :  { %p437_p0 = por %p436_p13, %p435_p12 }
  0x20   :  { %p438_p1 = pnand %p437_p0, %p431_p11 }
  0x22   :  { %441 = shalt.err (!%p438_p1)
}
  0x23   :  { %21 = dma.hbm_to_vmem [thread:$0]  %s592_s0, 128, %s19_s30, [#allocation3]  }
  0x24   :  { %s442_s18 = scalar_lea.hbm %s594_s2, 2048 }
  0x25   :  { %p443_p2 = scmp.ne.s32.totalorder %s594_s2, %s442_s18  ;;  %p446_p3 = scmp.lt.u32.totalorder %s442_s18, %s594_s2 }
  0x27   :  { %p448_p4 = pnand %p446_p3, %p443_p2 }
  0x29   :  { %451 = shalt.err (!%p448_p4)
}
  0x2a   :  { %s452_s23 = scalar_lea.vmem %s40_s6, 2048  ;;  %p457_p6 = scmp.lt.s32.totalorder %s40_s6, %s40_s6 }
  0x2b   :  { %p453_p5 = scmp.ne.s32.totalorder %s40_s6, %s452_s23  ;;  %p458_p7 = scmp.lt.s32.totalorder %s452_s23, %s452_s23 }
  0x2d   :  { %p459_p8 = por %p458_p7, %p457_p6 }
  0x2f   :  { %p460_p9 = pnand %p459_p8, %p453_p5 }
  0x31   :  { %463 = shalt.err (!%p460_p9)
}
  0x32   :  { %45 = dma.hbm_to_vmem [thread:$0]  %s594_s2, 2048, %s40_s6, [#allocation6], %s493_s25, %s493_s25, %s494_s26  }
  0x33   :  { %486 = dma.done.wait [#allocation3], 128  }
  0x34   :  { %487 = vsyncadd [#allocation3], 4294967168 }
  0x35   :  { %488 = dma.done.wait [#allocation6], 2560  }
  0x36   :  { %489 = vsyncadd [#allocation6], 4294964736  ;;  %v497_v0 = vmov 0.0|0.0   ;;  %vm498_vm0 = vmmov 0   ;;  %v499_v1 = vmov 0.0   ;;  %v58_v2 = vld [vmem:[#allocation5] sm:$0xff] }
  0x37   :  { %355 = vmatprep.subr.bf16.mxu0 %v497_v0  ;;  %317 = vmatprep.mubr.msk.f32.mxu0 %vm498_vm0, %v499_v1  ;;  %v59_v3 = vld [vmem:[#allocation5 + $0x8] sm:$0xff]  ;;  %v60_v4 = vld [vmem:[#allocation5 + $0x10] sm:$0xff]  ;;  %v61_v6 = vld [vmem:[#allocation5 + $0x18] sm:$0xff]  ;;  %vm67_vm1 = vcmask 261120   ;;  %s500_s6 = smov [#allocation8]  }
  0x38   :  { %361 = vmatprep.subr.bf16.mxu1 %v497_v0  ;;  %352 = vmatprep.mubr.msk.f32.mxu1 %vm498_vm0, %v499_v1  ;;  %v356_v5 = vpack.c.bf16 %v59_v3, %v58_v2  ;;  %v147_v7 = vld [vmem:[#allocation7] sm:$0xff]  ;;  %v148_v8 = vld [vmem:[#allocation7 + $0x8] sm:$0xff]  ;;  %v149_v9 = vld [vmem:[#allocation7 + $0x10] sm:$0xff]  ;;  %v359_v11 = vpack.c.bf16 %v61_v6, %v60_v4  ;;  %s272_s7 = sshll.u32 %s500_s6, 4  ;;  %s273_s7 = int_to_ptr.vmem [resolvable:$true] %s272_s7 }
  0x39   :  { %v150_v10 = vld [vmem:[#allocation7 + $0x18] sm:$0xff]  ;;  %v362_v12 = vpack.c.bf16 %v148_v8, %v147_v7  ;;  %v151_v14 = vld [vmem:[#allocation7 + $0x20] sm:$0xff]  ;;  %v152_v15 = vld [vmem:[#allocation7 + $0x28] sm:$0xff]  ;;  %s464_s8 = scalar_lea.vmem %s273_s7, 128  ;;  %p469_p11 = scmp.lt.s32.totalorder %s273_s7, %s273_s7 }
  0x3a   :  { %357 = vmatpush3.bf16.msra.mxu0 %v356_v5  ;;  %v365_v13 = vpack.c.bf16 %v150_v10, %v149_v9  ;;  %v57_v16 = vld [vmem:[#allocation2] sm:$0xff]  ;;  %v368_v17 = vpack.c.bf16 %v152_v15, %v151_v14  ;;  %v153_v18 = vld [vmem:[#allocation7 + $0x30] sm:$0xff]  ;;  %v155_v21 = vld [vmem:[#allocation7 + $0x40] sm:$0xff]  ;;  %p465_p10 = scmp.ne.s32.totalorder %s273_s7, %s464_s8  ;;  %p470_p12 = scmp.lt.s32.totalorder %s464_s8, %s464_s8 }
  0x3b   :  { %358 = vmatprep.subr.bf16.mxu0 %v497_v0  ;;  %363 = vmatpush3.bf16.msra.mxu1 %v362_v12  ;;  %v154_v19 = vld [vmem:[#allocation7 + $0x38] sm:$0xff]  ;;  %v156_v22 = vld [vmem:[#allocation7 + $0x48] sm:$0xff]  ;;  %v157_v24 = vld [vmem:[#allocation7 + $0x50] sm:$0xff] }
  0x3c   :  { %364 = vmatprep.subr.bf16.mxu1 %v497_v0  ;;  %v371_v20 = vpack.c.bf16 %v154_v19, %v153_v18  ;;  %v374_v23 = vpack.c.bf16 %v156_v22, %v155_v21  ;;  %v158_v25 = vld [vmem:[#allocation7 + $0x58] sm:$0xff]  ;;  %v159_v27 = vld [vmem:[#allocation7 + $0x60] sm:$0xff]  ;;  %v160_v28 = vld [vmem:[#allocation7 + $0x68] sm:$0xff]  ;;  %p471_p13 = por %p470_p12, %p469_p11 }
  0x3d   :  { %v377_v26 = vpack.c.bf16 %v158_v25, %v157_v24  ;;  %v380_v29 = vpack.c.bf16 %v160_v28, %v159_v27  ;;  %v161_v30 = vld [vmem:[#allocation7 + $0x70] sm:$0xff]  ;;  %v162_v31 = vld [vmem:[#allocation7 + $0x78] sm:$0xff] }
  0x3e   :  { %360 = vmatpush3.bf16.msra.mxu0 %v359_v11  ;;  %v383_v32 = vpack.c.bf16 %v162_v31, %v161_v30  ;;  %v282_v33 = vld [vmem:[%s595_s3] ss:$0 sm:$0xff]  ;;  %v284_v42 = vld [vmem:[%s595_s3 + $0x1] ss:$0 sm:$0xff]  ;;  %v285_v58 = vld [vmem:[%s595_s3 + $0x2] ss:$0 sm:$0xff]  ;;  %p472_p0 = pnand %p471_p13, %p465_p10 }
  0x3f   :  { %366 = vmatpush3.bf16.msra.mxu1 %v365_v13  ;;  %v286_v60 = vld [vmem:[%s595_s3 + $0x3] ss:$0 sm:$0xff] }
  0x40   :  { %367 = vmatprep.subr.bf16.mxu1 %v497_v0 }
  0x41   :  { %318 = vmatmul.mubr.msk.f32.vlgmr.msra.gmra.mrb[0].mxu0 %vm67_vm1, %v57_v16 }
  0x43   :  { %369 = vmatpush3.bf16.msra.mxu1 %v368_v17 }
  0x44   :  { %370 = vmatprep.subr.bf16.mxu1 %v497_v0 }
  0x47   :  { %372 = vmatpush3.bf16.msra.mxu1 %v371_v20 }
  0x48   :  { %373 = vmatprep.subr.bf16.mxu1 %v497_v0 }
  0x4b   :  { %375 = vmatpush3.bf16.msra.mxu1 %v374_v23 }
  0x4c   :  { %376 = vmatprep.subr.bf16.mxu1 %v497_v0 }
  0x4f   :  { %378 = vmatpush3.bf16.msra.mxu1 %v377_v26 }
  0x50   :  { %379 = vmatprep.subr.bf16.mxu1 %v497_v0 }
  0x53   :  { %381 = vmatpush3.bf16.msra.mxu1 %v380_v29 }
  0x54   :  { %382 = vmatprep.subr.bf16.mxu1 %v497_v0 }
  0x57   :  { %384 = vmatpush3.bf16.msra.mxu1 %v383_v32 }
 0x114   :  { %v137_v34 = vpop.f32.mrb[0].mxu0 }
 0x115   :  { %v138_v35 = vadd.f32 %v282_v33, %v137_v34  ;;  %v319_v36 = vpop.f32.mrb[1].mxu0 }
 0x117   :  { %v143_v37 = vmul.f32 0.70710677, %v138_v35  ;;  %v141_v39 = vmul.f32 0.5, %v138_v35 }
 0x119   :  { %394 = verf.f32 %v143_v37 }
 0x123   :  { %v395_v38 = vpop.eup %394 }
 0x124   :  { %v145_v40 = vadd.f32 1.0, %v395_v38 }
 0x126   :  { %v146_v41 = vmul.f32 %v145_v40, %v141_v39 }
 0x128   :  { %353 = vmatmul.mubr.f32.vlgmr.msra.gmra.mrb[0].mxu1 %v146_v41 }
 0x1fb   :  { %v234_v43 = vpop.f32.mrb[0].mxu1 }
 0x1fc   :  { %v235_v44 = vadd.f32 %v284_v42, %v234_v43  ;;  %v354_v45 = vpop.f32.mrb[1].mxu1 }
 0x1fe   :  { %v238_v46 = vadd.f32 %v235_v44, %v146_v41 }
 0x200   :  { %239 = vadd.xlane.f32.xlu0 %v238_v46  ;;  %v242_v47 = vmul.f32 %v238_v46, %v238_v46 }
 0x204   :  { %243 = vadd.xlane.f32.xlu0 %v242_v47 }
 0x28d   :  { %v240_v48 = vpop.xlane.xlu0 %239 }
 0x28e   :  { %v241_v49 = vmul.f32 0.0078125, %v240_v48 }
 0x290   :  { %v246_v51 = vmul.f32 %v241_v49, %v241_v49  ;;  %v249_v56 = vsub.f32 %v238_v46, %v241_v49 }
 0x291   :  { %v244_v50 = vpop.xlane.xlu0 %243 }
 0x292   :  { %v245_v52 = vmul.f32 0.0078125, %v244_v50 }
 0x294   :  { %v247_v53 = vsub.f32 %v245_v52, %v246_v51 }
 0x296   :  { %v248_v54 = vmax.f32 %v247_v53, 0.0 }
 0x298   :  { %v250_v55 = vadd.f32 1e-05, %v248_v54 }
 0x29a   :  { %396 = vrsqrt.f32 %v250_v55 }
 0x2a4   :  { %v397_v57 = vpop.eup %396 }
 0x2a5   :  { %v252_v59 = vmul.f32 %v397_v57, %v249_v56 }
 0x2a7   :  { %v258_v61 = vmul.f32 %v285_v58, %v252_v59 }
 0x2a9   :  { %v264_v62 = vadd.f32 %v286_v60, %v258_v61 }
 0x2ab   :  { %265 = vst [vmem:[#allocation8] sm:$0xff] %v264_v62 }
 0x2ac   :  { %475 = shalt.err (!%p472_p0)
}
 0x2ad   :  { %s476_s11 = scalar_lea.hbm %s596_s4, 128 }
 0x2ae   :  { %p477_p1 = scmp.ne.s32.totalorder %s596_s4, %s476_s11  ;;  %p480_p2 = scmp.lt.u32.totalorder %s476_s11, %s596_s4 }
 0x2b0   :  { %p482_p3 = pnand %p480_p2, %p477_p1 }
 0x2b2   :  { %485 = shalt.err (!%p482_p3)
}
 0x2b3   :  { %275 = dma.vmem_to_hbm [thread:$0]  %s273_s7, 128, %s596_s4, [#allocation4]  }
 0x2b4   :  { %490 = dma.done.wait [#allocation4], 128  }
 0x2b5   :  { %491 = vsyncadd [#allocation4], 4294967168 }
 0x2b6   :  { %279 = vsyncpa [#allocation3], 1 }
 0x2b7   :  { %280 = vsyncpa [#allocation6], 1 }
 0x2b8   :  { %281 = vsyncpa [#allocation4], 1 }

</bundles_post_ra>
